<compile_context>
chip_gen: v6e
topology: v6e:2x2x1
jax: 0.10.0
libtpu: 0.0.40
codegen_flags: <defaults>
</compile_context>

<pallas_src>
import jax
import jax.numpy as jnp
from jax.experimental import pallas as pl
from jax.experimental.pallas import tpu as pltpu


def _glayer_kernel(x_ref, w1_ref, b1_ref, w2_ref, b2_ref, o_ref):
    # x_ref: (tn_p, PW) tile in natural (packed) layout.
    # Weights are pre-transposed / block-diagonalized so both matmuls are
    # plain `x @ W` — no transposes anywhere, f32 MXU accumulation.
    hp = jax.lax.Precision.HIGHEST
    x = x_ref[...]
    h = jnp.dot(x, w1_ref[...], preferred_element_type=jnp.float32,
                precision=hp) + b1_ref[...]
    # Softplus, branch-free: softplus(x) = max(x, 0) + log1p(exp(-|x|)).
    # Equals PyTorch's thresholded softplus (beta=1, threshold=20) to <2e-9.
    sp = jnp.maximum(h, 0.0) + jnp.log1p(jnp.exp(-jnp.abs(h)))
    out = jnp.dot(sp, w2_ref[...], preferred_element_type=jnp.float32,
                  precision=hp) + b2_ref[...]
    o_ref[...] = out.astype(o_ref.dtype)


def _round_up(a, m):
    return ((a + m - 1) // m) * m


def glayer_forward(x, w1, b1, w2, b2, *, tile_rows=None):
    """x: [N, E]; w1, w2: [E, E] in PyTorch (out, in) layout; b1, b2: [E]."""
    N, E = x.shape
    dtype = x.dtype
    itemsize = jnp.dtype(dtype).itemsize

    # Lane packing factor: fold `pack` rows of width E into one 128-wide row.
    pack = (128 // E) if (E <= 128 and 128 % E == 0) else 1
    PW = pack * E

    # Block-diagonal (transposed) weights + tiled biases: built once, tiny.
    eye = jnp.eye(pack, dtype=w1.dtype)
    w1bd = jnp.kron(eye, w1.T)                 # (PW, PW)
    w2bd = jnp.kron(eye, w2.T)                 # (PW, PW)
    b1r = jnp.tile(b1, pack).reshape(1, PW)
    b2r = jnp.tile(b2, pack).reshape(1, PW)

    # Pad N to a multiple of `pack` (zero rows, sliced off afterwards), then
    # do the zero-copy row-major reshape into packed layout.
    n_pad = _round_up(N, pack)
    xp = x if n_pad == N else jnp.pad(x, ((0, n_pad - N), (0, 0)))
    rp = n_pad // pack                         # packed rows
    xpk = xp.reshape(rp, PW)

    # Tile selection: big tiles amortize the ~0.35 us/step overhead; cap at
    # ~2 MiB per buffer (VMEM-safe on v7x even with double-buffered x + out),
    # and keep several grid steps for large N so megacore sharding + DMA
    # overlap actually engage.
    if tile_rows is None:
        max_tile_p = max(8, (((2 << 20) // (PW * itemsize)) // 8) * 8)
        tn_p = min(max_tile_p, _round_up(pl.cdiv(rp, 8), 8))
    else:
        tn_p = max(8, _round_up(max(1, tile_rows // pack), 8))
    if tn_p >= rp:
        tn_p = rp                              # single full-extent block
    grid = (pl.cdiv(rp, tn_p),)

    cost = pl.CostEstimate(
        flops=4 * n_pad * E * E,               # two E x E matmuls over N rows
        transcendentals=2 * n_pad * E,         # exp + log1p per element
        bytes_accessed=(2 * n_pad * E + 2 * PW * PW + 2 * PW) * itemsize,
    )

    out_pk = pl.pallas_call(
        _glayer_kernel,
        out_shape=jax.ShapeDtypeStruct((rp, PW), dtype),
        grid=grid,
        in_specs=[
            pl.BlockSpec((tn_p, PW), lambda i: (i, 0)),   # x tile (pipelined)
            pl.BlockSpec((PW, PW), lambda i: (0, 0)),     # W1bd (VMEM-resident)
            pl.BlockSpec((1, PW), lambda i: (0, 0)),      # b1
            pl.BlockSpec((PW, PW), lambda i: (0, 0)),     # W2bd (VMEM-resident)
            pl.BlockSpec((1, PW), lambda i: (0, 0)),      # b2
        ],
        out_specs=pl.BlockSpec((tn_p, PW), lambda i: (i, 0)),
        compiler_params=pltpu.CompilerParams(
            dimension_semantics=("parallel",)),           # megacore on v7x
        cost_estimate=cost,
    )(xpk, w1bd, b1r, w2bd, b2r)

    out = out_pk.reshape(n_pad, E)             # zero-copy reshape back
    return out if n_pad == N else out[:N]


def _reference(x, w1, b1, w2, b2):
    hp = jax.lax.Precision.HIGHEST
    h = jnp.dot(x, w1.T, precision=hp) + b1
    sp = jnp.maximum(h, 0.0) + jnp.log1p(jnp.exp(-jnp.abs(h)))
    return jnp.dot(sp, w2.T, precision=hp) + b2


if __name__ == "__main__":
    num_embeddings = 32   # E
    embedding_dim = 16    # dim of unused self.weight
    batch = 8             # N (rows of x_j)

    key = jax.random.PRNGKey(0)
    k_emb, k_w1, k_b1, k_w2, k_b2, k_x, k_x2, k_x3 = jax.random.split(key, 8)

    # Deterministic parameter init (PyTorch-Linear-style uniform bounds).
    bound = 1.0 / jnp.sqrt(num_embeddings)
    embedding_weight = jax.random.normal(
        k_emb, (num_embeddings, embedding_dim), jnp.float32)  # unused in fwd
    w1 = jax.random.uniform(k_w1, (num_embeddings, num_embeddings),
                            jnp.float32, -bound, bound)
    b1 = jax.random.uniform(k_b1, (num_embeddings,), jnp.float32, -bound, bound)
    w2 = jax.random.uniform(k_w2, (num_embeddings, num_embeddings),
                            jnp.float32, -bound, bound)
    b2 = jax.random.uniform(k_b2, (num_embeddings,), jnp.float32, -bound, bound)

    # Small case (single block, full-extent tile).
    x_j = jax.random.normal(k_x, (batch, num_embeddings), jnp.float32)
    out = jax.block_until_ready(glayer_forward(x_j, w1, b1, w2, b2))
    ref = _reference(x_j, w1, b1, w2, b2)
    assert out.shape == (batch, num_embeddings)
    assert jnp.allclose(out, ref, atol=1e-5, rtol=1e-5)

    # Multi-step grid + remainder tile (correctness coverage of the pipelined
    # path; perf-relevant N would use the auto tile, which is much larger).
    x_big = jax.random.normal(k_x2, (1300, num_embeddings), jnp.float32)
    out_big = jax.block_until_ready(
        glayer_forward(x_big, w1, b1, w2, b2, tile_rows=512))
    ref_big = _reference(x_big, w1, b1, w2, b2)
    assert out_big.shape == (1300, num_embeddings)
    assert jnp.allclose(out_big, ref_big, atol=1e-5, rtol=1e-5)

    # N not divisible by the pack factor (exercises the pad + slice path).
    x_odd = jax.random.normal(k_x3, (10, num_embeddings), jnp.float32)
    out_odd = jax.block_until_ready(glayer_forward(x_odd, w1, b1, w2, b2))
    ref_odd = _reference(x_odd, w1, b1, w2, b2)
    assert out_odd.shape == (10, num_embeddings)
    assert jnp.allclose(out_odd, ref_odd, atol=1e-5, rtol=1e-5)

    print("KERNEL_OK")
</pallas_src>

<mosaic_0001>
module attributes {stable_mosaic.version = 11 : i64} {
  func.func @_glayer_kernel(%arg0: i32, %arg1: memref<2x128xf32, #tpu.memory_space<vmem>>, %arg2: memref<128x128xf32, #tpu.memory_space<vmem>>, %arg3: memref<1x128xf32, #tpu.memory_space<vmem>>, %arg4: memref<128x128xf32, #tpu.memory_space<vmem>>, %arg5: memref<1x128xf32, #tpu.memory_space<vmem>>, %arg6: memref<2x128xf32, #tpu.memory_space<vmem>>) attributes {dimension_semantics = [#tpu.dimension_semantics<parallel>], iteration_bounds = array<i64: 1>, scalar_prefetch = 0 : i64, scratch_operands = 0 : i64, tpu.core_type = #tpu.core_type<tc>, window_params = [{transform_indices = @transform_0, window_bounds = array<i64: 2, 128>}, {pipeline_mode = #tpu.pipeline_mode<synchronous>, transform_indices = @transform_1, window_bounds = array<i64: 128, 128>}, {pipeline_mode = #tpu.pipeline_mode<synchronous>, transform_indices = @transform_2, window_bounds = array<i64: 1, 128>}, {pipeline_mode = #tpu.pipeline_mode<synchronous>, transform_indices = @transform_3, window_bounds = array<i64: 128, 128>}, {pipeline_mode = #tpu.pipeline_mode<synchronous>, transform_indices = @transform_4, window_bounds = array<i64: 1, 128>}, {transform_indices = @transform_5, window_bounds = array<i64: 2, 128>}]} {
    %c0 = arith.constant 0 : index
    %c0_0 = arith.constant 0 : index
    %0 = vector.load %arg1[%c0, %c0_0] : memref<2x128xf32, #tpu.memory_space<vmem>>, vector<2x128xf32>
    %c0_1 = arith.constant 0 : index
    %c0_2 = arith.constant 0 : index
    %1 = vector.load %arg2[%c0_1, %c0_2] : memref<128x128xf32, #tpu.memory_space<vmem>>, vector<128x128xf32>
    %cst = arith.constant dense<0.000000e+00> : vector<2x128xf32>
    %2 = tpu.matmul %0, %1, %cst {dimension_numbers = #tpu.dot_dimension_numbers<[1], [0], [0], [1], [0, 0, 1, 1], [], []>, precision = #tpu.contract_precision<fp32>} : vector<2x128xf32>, vector<128x128xf32>, vector<2x128xf32> -> vector<2x128xf32>
    %c0_3 = arith.constant 0 : index
    %c0_4 = arith.constant 0 : index
    %3 = vector.load %arg3[%c0_3, %c0_4] : memref<1x128xf32, #tpu.memory_space<vmem>>, vector<1x128xf32>
    %4 = vector.broadcast %3 : vector<1x128xf32> to vector<2x128xf32>
    %5 = arith.addf %2, %4 : vector<2x128xf32>
    %cst_5 = arith.constant 0.000000e+00 : f32
    %6 = vector.broadcast %cst_5 : f32 to vector<2x128xf32>
    %7 = arith.maximumf %5, %6 : vector<2x128xf32>
    %8 = math.absf %5 : vector<2x128xf32>
    %cst_6 = arith.constant 0.000000e+00 : f32
    %9 = vector.broadcast %cst_6 : f32 to vector<2x128xf32>
    %10 = arith.subf %9, %8 : vector<2x128xf32>
    %11 = math.exp %10 : vector<2x128xf32>
    %12 = math.log1p %11 : vector<2x128xf32>
    %13 = arith.addf %7, %12 : vector<2x128xf32>
    %c0_7 = arith.constant 0 : index
    %c0_8 = arith.constant 0 : index
    %14 = vector.load %arg4[%c0_7, %c0_8] : memref<128x128xf32, #tpu.memory_space<vmem>>, vector<128x128xf32>
    %cst_9 = arith.constant dense<0.000000e+00> : vector<2x128xf32>
    %15 = tpu.matmul %13, %14, %cst_9 {dimension_numbers = #tpu.dot_dimension_numbers<[1], [0], [0], [1], [0, 0, 1, 1], [], []>, precision = #tpu.contract_precision<fp32>} : vector<2x128xf32>, vector<128x128xf32>, vector<2x128xf32> -> vector<2x128xf32>
    %c0_10 = arith.constant 0 : index
    %c0_11 = arith.constant 0 : index
    %16 = vector.load %arg5[%c0_10, %c0_11] : memref<1x128xf32, #tpu.memory_space<vmem>>, vector<1x128xf32>
    %17 = vector.broadcast %16 : vector<1x128xf32> to vector<2x128xf32>
    %18 = arith.addf %15, %17 : vector<2x128xf32>
    %c0_12 = arith.constant 0 : index
    %c0_13 = arith.constant 0 : index
    %19 = vector.load %arg6[%c0_12, %c0_13] : memref<2x128xf32, #tpu.memory_space<vmem>>, vector<2x128xf32>
    tpu.vector_store %arg6[%c0_12, %c0_13], %18 {strides = array<i32>} : memref<2x128xf32, #tpu.memory_space<vmem>>, vector<2x128xf32>,
    return
  }
  func.func @transform_0(%arg0: i32) -> (i32, i32) {
    %c0_i32 = arith.constant 0 : i32
    %c0_i32_0 = arith.constant 0 : i32
    return %arg0, %c0_i32 : i32, i32
  }
  func.func @transform_1(%arg0: i32) -> (i32, i32) {
    %c0_i32 = arith.constant 0 : i32
    %c0_i32_0 = arith.constant 0 : i32
    %c0_i32_1 = arith.constant 0 : i32
    return %c0_i32, %c0_i32_0 : i32, i32
  }
  func.func @transform_2(%arg0: i32) -> (i32, i32) {
    %c0_i32 = arith.constant 0 : i32
    %c0_i32_0 = arith.constant 0 : i32
    %c0_i32_1 = arith.constant 0 : i32
    return %c0_i32, %c0_i32_0 : i32, i32
  }
  func.func @transform_3(%arg0: i32) -> (i32, i32) {
    %c0_i32 = arith.constant 0 : i32
    %c0_i32_0 = arith.constant 0 : i32
    %c0_i32_1 = arith.constant 0 : i32
    return %c0_i32, %c0_i32_0 : i32, i32
  }
  func.func @transform_4(%arg0: i32) -> (i32, i32) {
    %c0_i32 = arith.constant 0 : i32
    %c0_i32_0 = arith.constant 0 : i32
    %c0_i32_1 = arith.constant 0 : i32
    return %c0_i32, %c0_i32_0 : i32, i32
  }
  func.func @transform_5(%arg0: i32) -> (i32, i32) {
    %c0_i32 = arith.constant 0 : i32
    %c0_i32_0 = arith.constant 0 : i32
    return %arg0, %c0_i32 : i32, i32
  }
}

</mosaic_0001>

<bundles_post_ra>
// kernel: tpu_custom_call.1
= control target key start
LH: loop header
LB: loop body
LE: loop exit
PB: predicated region body
PF: predicated region fallthrough
CT: control target
= control target key end

     0   :  { %10 = vsyncpa [#allocation3], 0  ;;  %s2923_s0 = inlined_call_operand.hbm [shape: f32[2,128], index: 0, kind: input, shape index: {}]   ;;  %s2924_s1 = inlined_call_operand.hbm [shape: f32[128,128], index: 1, kind: input, shape index: {}]   ;;  %s2925_s2 = inlined_call_operand.vmem [shape: f32[1,128], index: 2, kind: input, shape index: {}]   ;;  %s2926_s3 = inlined_call_operand.hbm [shape: f32[128,128], index: 3, kind: input, shape index: {}]   ;;  %s2927_s4 = inlined_call_operand.vmem [shape: f32[1,128], index: 4, kind: input, shape index: {}]   ;;  %s2928_s5 = inlined_call_operand.hbm [shape: f32[2,128], index: 5, kind: output, shape index: {}]  }
   0x1   :  { %11 = vsyncpa [#allocation6], 0 }
   0x2   :  { %12 = vsyncpa [#allocation4], 0  ;;  %s2145_s18 = smov [#allocation5]  }
   0x3   :  { %s28_s19 = sshll.u32 %s2145_s18, 4  ;;  %s29_s19 = int_to_ptr.vmem [resolvable:$true] %s28_s19 }
   0x4   :  { %s2067_s20 = scalar_lea.vmem %s29_s19, 2048  ;;  %p2072_p1 = scmp.lt.s32.totalorder %s29_s19, %s29_s19 }
   0x5   :  { %p2068_p0 = scmp.ne.s32.totalorder %s29_s19, %s2067_s20  ;;  %p2073_p2 = scmp.lt.s32.totalorder %s2067_s20, %s2067_s20 }
   0x7   :  { %p2074_p3 = por %p2073_p2, %p2072_p1 }
   0x9   :  { %p2075_p4 = pnand %p2074_p3, %p2068_p0 }
   0xb   :  { %2078 = shalt.err (!%p2075_p4)
}
   0xc   :  { %s2146_s21 = smov 128   ;;  %s2147_s22 = smov 8  }
   0xd   :  { %34 = dma.hbm_to_vmem [thread:$0]  %s2924_s1, 2048, %s29_s19, [#allocation6], %s2146_s21, %s2146_s21, %s2147_s22  }
   0xe   :  { %s2148_s25 = smov [#allocation2]   ;;  %s2149_s27 = smov [#allocation7]  }
   0xf   :  { %s19_s26 = sshll.u32 %s2148_s25, 4  ;;  %s42_s28 = sshll.u32 %s2149_s27, 4  ;;  %s20_s26 = int_to_ptr.vmem [resolvable:$true] %s19_s26  ;;  %s43_s28 = int_to_ptr.vmem [resolvable:$true] %s42_s28 }
  0x10   :  { %s2087_s29 = scalar_lea.vmem %s20_s26, 32  ;;  %p2092_p6 = scmp.lt.s32.totalorder %s20_s26, %s20_s26 }
  0x11   :  { %p2088_p5 = scmp.ne.s32.totalorder %s20_s26, %s2087_s29  ;;  %p2093_p7 = scmp.lt.s32.totalorder %s2087_s29, %s2087_s29 }
  0x13   :  { %p2094_p8 = por %p2093_p7, %p2092_p6 }
  0x15   :  { %p2095_p9 = pnand %p2094_p8, %p2088_p5 }
  0x17   :  { %2098 = shalt.err (!%p2095_p9)
}
  0x18   :  { %22 = dma.hbm_to_vmem [thread:$0]  %s2923_s0, 32, %s20_s26, [#allocation3]  }
  0x19   :  { %s2107_s7 = scalar_lea.vmem %s43_s28, 2048  ;;  %p2112_p11 = scmp.lt.s32.totalorder %s43_s28, %s43_s28 }
  0x1a   :  { %p2108_p10 = scmp.ne.s32.totalorder %s43_s28, %s2107_s7  ;;  %p2113_p12 = scmp.lt.s32.totalorder %s2107_s7, %s2107_s7 }
  0x1c   :  { %p2114_p13 = por %p2113_p12, %p2112_p11 }
  0x1e   :  { %p2115_p0 = pnand %p2114_p13, %p2108_p10 }
  0x20   :  { %2118 = shalt.err (!%p2115_p0)
}
  0x21   :  { %48 = dma.hbm_to_vmem [thread:$0]  %s2926_s3, 2048, %s43_s28, [#allocation6], %s2146_s21, %s2146_s21, %s2147_s22  }
  0x22   :  { %2139 = dma.done.wait [#allocation3], 32  }
  0x23   :  { %2140 = vsyncadd [#allocation3], 4294967264 }
  0x24   :  { %2141 = dma.done.wait [#allocation6], 4096  }
  0x25   :  { %2142 = vsyncadd [#allocation6], 4294963200  ;;  %v2150_v0 = vmov 0.0   ;;  %vm2151_vm0 = vmmov 0   ;;  %v76_v1 = vld [vmem:[#allocation5 + $0x78] sm:$0xff]  ;;  %v75_v2 = vld [vmem:[#allocation5 + $0x70] sm:$0xff] }
  0x26   :  { %1627 = vmatprep.subr.mxu0 %v2150_v0  ;;  %1662 = vmatprep.subr.mxu1 %v2150_v0  ;;  %v74_v3 = vld [vmem:[#allocation5 + $0x68] sm:$0xff]  ;;  %v2198_v4 = vand.u32 4294901760, %v76_v1  ;;  %v2200_v5 = vand.u32 4294901760, %v75_v2  ;;  %v73_v7 = vld [vmem:[#allocation5 + $0x60] sm:$0xff]  ;;  %v72_v8 = vld [vmem:[#allocation5 + $0x58] sm:$0xff]  ;;  %s2152_s10 = smov [#allocation8]  }
  0x27   :  { %1659 = vmatprep.mubr.msk.f32.mxu0 %vm2151_vm0, %v2150_v0  ;;  %1694 = vmatprep.mubr.msk.f32.mxu1 %vm2151_vm0, %v2150_v0  ;;  %v2202_v6 = vand.u32 4294901760, %v74_v3  ;;  %v71_v9 = vld [vmem:[#allocation5 + $0x50] sm:$0xff]  ;;  %v2204_v10 = vand.u32 4294901760, %v73_v7  ;;  %v2206_v11 = vand.u32 4294901760, %v72_v8  ;;  %v70_v13 = vld [vmem:[#allocation5 + $0x48] sm:$0xff]  ;;  %v69_v14 = vld [vmem:[#allocation5 + $0x40] sm:$0xff] }
  0x28   :  { %v2208_v12 = vand.u32 4294901760, %v71_v9  ;;  %1628 = vmatpush3.msra.mxu0 %v2198_v4  ;;  %v2212_v15 = vsub.f32 %v76_v1, %v2198_v4  ;;  %v2215_v16 = vsub.f32 %v75_v2, %v2200_v5  ;;  %v2217_v17 = vand.u32 4294901760, %v70_v13  ;;  %v68_v19 = vld [vmem:[#allocation5 + $0x38] sm:$0xff]  ;;  %v67_v26 = vld [vmem:[#allocation5 + $0x30] sm:$0xff]  ;;  %v66_v36 = vld [vmem:[#allocation5 + $0x28] sm:$0xff]  ;;  %s1411_s11 = sshll.u32 %s2152_s10, 4  ;;  %s1412_s11 = int_to_ptr.vmem [resolvable:$true] %s1411_s11 }
  0x29   :  { %v2220_v18 = vsub.f32 %v74_v3, %v2202_v6  ;;  %1629 = vmatprep.subr.mxu0 %v2150_v0  ;;  %v2224_v20 = vsub.f32 %v73_v7, %v2204_v10  ;;  %v2227_v21 = vsub.f32 %v72_v8, %v2206_v11  ;;  %v2233_v25 = vand.u32 4294901760, %v69_v14  ;;  %v65_v41 = vld [vmem:[#allocation5 + $0x20] sm:$0xff]  ;;  %v64_v49 = vld [vmem:[#allocation5 + $0x18] sm:$0xff]  ;;  %v63_v54 = vld [vmem:[#allocation5 + $0x10] sm:$0xff]  ;;  %s2119_s12 = scalar_lea.vmem %s1412_s11, 32  ;;  %p2124_p2 = scmp.lt.s32.totalorder %s1412_s11, %s1412_s11 }
  0x2a   :  { %1630 = vmatpush3.msra.mxu0 %v2200_v5  ;;  %v178_v22 = vand.u32 4294901760, %v2212_v15  ;;  %v185_v23 = vand.u32 4294901760, %v2215_v16  ;;  %v2237_v28 = vand.u32 4294901760, %v68_v19  ;;  %v2241_v30 = vsub.f32 %v71_v9, %v2208_v12  ;;  %v60_v50 = vld [vmem:[#allocation2] sm:$0x3]  ;;  %v62_v60 = vld [vmem:[#allocation5 + $0x8] sm:$0xff]  ;;  %p2120_p1 = scmp.ne.s32.totalorder %s1412_s11, %s2119_s12  ;;  %p2125_p3 = scmp.lt.s32.totalorder %s2119_s12, %s2119_s12 }
  0x2b   :  { %v192_v24 = vand.u32 4294901760, %v2220_v18  ;;  %1631 = vmatprep.subr.mxu0 %v2150_v0  ;;  %v199_v27 = vand.u32 4294901760, %v2224_v20  ;;  %v206_v29 = vand.u32 4294901760, %v2227_v21  ;;  %v2254_v34 = vsub.f32 %v70_v13, %v2217_v17  ;;  %v61_v7 = vld [vmem:[#allocation5] sm:$0xff] }
  0x2c   :  { %1632 = vmatpush3.msra.mxu0 %v2202_v6  ;;  %v179_v31 = vsub.f32 %v2212_v15, %v178_v22  ;;  %v186_v32 = vsub.f32 %v2215_v16, %v185_v23  ;;  %v2257_v35 = vand.u32 4294901760, %v67_v26  ;;  %v213_v40 = vand.u32 4294901760, %v2241_v30  ;;  %p2126_p4 = por %p2125_p3, %p2124_p2 }
  0x2d   :  { %v193_v33 = vsub.f32 %v2220_v18, %v192_v24  ;;  %1633 = vmatprep.subr.mxu0 %v2150_v0  ;;  %v200_v39 = vsub.f32 %v2224_v20, %v199_v27  ;;  %v207_v42 = vsub.f32 %v2227_v21, %v206_v29  ;;  %v2269_v43 = vsub.f32 %v69_v14, %v2233_v25 }
  0x2e   :  { %1634 = vmatpush3.msra.mxu0 %v2204_v10  ;;  %v180_v37 = vand.u32 4294901760, %v179_v31  ;;  %v187_v38 = vand.u32 4294901760, %v186_v32  ;;  %v2272_v45 = vand.u32 4294901760, %v66_v36  ;;  %v220_v46 = vand.u32 4294901760, %v2254_v34  ;;  %p2127_p5 = pnand %p2126_p4, %p2120_p1 }
  0x2f   :  { %1635 = vmatprep.subr.mxu0 %v2150_v0  ;;  %v194_v44 = vand.u32 4294901760, %v193_v33  ;;  %v2276_v47 = vsub.f32 %v68_v19, %v2237_v28  ;;  %v2280_v48 = vand.u32 4294901760, %v65_v41  ;;  %v201_v51 = vand.u32 4294901760, %v200_v39 }
  0x30   :  { %1636 = vmatpush3.msra.mxu0 %v2206_v11  ;;  %1663 = vmatpush3.msra.mxu1 %v180_v37  ;;  %v214_v52 = vsub.f32 %v2241_v30, %v213_v40  ;;  %v227_v53 = vand.u32 4294901760, %v2269_v43  ;;  %v2288_v55 = vsub.f32 %v67_v26, %v2257_v35  ;;  %v208_v56 = vand.u32 4294901760, %v207_v42 }
  0x31   :  { %1637 = vmatprep.subr.mxu0 %v2150_v0  ;;  %1664 = vmatprep.subr.mxu1 %v2150_v0  ;;  %v234_v57 = vand.u32 4294901760, %v2276_v47  ;;  %v221_v58 = vsub.f32 %v2254_v34, %v220_v46  ;;  %v2297_v59 = vand.u32 4294901760, %v64_v49  ;;  %v2300_v61 = vsub.f32 %v66_v36, %v2272_v45 }
  0x32   :  { %1638 = vmatpush3.msra.mxu0 %v2208_v12  ;;  %1665 = vmatpush3.msra.mxu1 %v187_v38  ;;  %v2302_v62 = vand.u32 4294901760, %v60_v50  ;;  %v2306_v63 = vand.u32 4294901760, %v63_v54  ;;  %v215_v1 = vand.u32 4294901760, %v214_v52  ;;  %v228_v2 = vsub.f32 %v2269_v43, %v227_v53 }
  0x33   :  { %1639 = vmatprep.subr.mxu0 %v2150_v0  ;;  %1666 = vmatprep.subr.mxu1 %v2150_v0  ;;  %v241_v3 = vand.u32 4294901760, %v2288_v55  ;;  %v2314_v8 = vsub.f32 %v65_v41, %v2280_v48  ;;  %v235_v9 = vsub.f32 %v2276_v47, %v234_v57  ;;  %v2321_v13 = vand.u32 4294901760, %v62_v60 }
  0x34   :  { %1640 = vmatpush3.msra.mxu0 %v2217_v17  ;;  %1667 = vmatpush3.msra.mxu1 %v194_v44  ;;  %v222_v14 = vand.u32 4294901760, %v221_v58  ;;  %v248_v19 = vand.u32 4294901760, %v2300_v61  ;;  %v2326_v26 = vsub.f32 %v60_v50, %v2302_v62  ;;  %v2329_v31 = vsub.f32 %v64_v49, %v2297_v59 }
  0x35   :  { %1641 = vmatprep.subr.mxu0 %v2150_v0  ;;  %1668 = vmatprep.subr.mxu1 %v2150_v0  ;;  %v2333_v32 = vand.u32 4294901760, %v61_v7  ;;  %v229_v33 = vand.u32 4294901760, %v228_v2  ;;  %v242_v36 = vsub.f32 %v2288_v55, %v241_v3  ;;  %v255_v37 = vand.u32 4294901760, %v2314_v8 }
  0x36   :  { %1642 = vmatpush3.msra.mxu0 %v2233_v25  ;;  %1669 = vmatpush3.msra.mxu1 %v201_v51  ;;  %v2341_v38 = vsub.f32 %v63_v54, %v2306_v63  ;;  %v236_v39 = vand.u32 4294901760, %v235_v9  ;;  %v249_v41 = vsub.f32 %v2300_v61, %v248_v19  ;;  %v167_v42 = vand.u32 4294901760, %v2326_v26 }
  0x37   :  { %1643 = vmatprep.subr.mxu0 %v2150_v0  ;;  %1670 = vmatprep.subr.mxu1 %v2150_v0  ;;  %v262_v44 = vand.u32 4294901760, %v2329_v31  ;;  %v2352_v49 = vsub.f32 %v62_v60, %v2321_v13  ;;  %v243_v50 = vand.u32 4294901760, %v242_v36  ;;  %v256_v51 = vsub.f32 %v2314_v8, %v255_v37 }
  0x38   :  { %1644 = vmatpush3.msra.mxu0 %v2237_v28  ;;  %1671 = vmatpush3.msra.mxu1 %v208_v56  ;;  %v269_v52 = vand.u32 4294901760, %v2341_v38  ;;  %v2362_v54 = vsub.f32 %v61_v7, %v2333_v32  ;;  %v250_v56 = vand.u32 4294901760, %v249_v41  ;;  %v168_v58 = vsub.f32 %v2326_v26, %v167_v42 }
  0x39   :  { %1645 = vmatprep.subr.mxu0 %v2150_v0  ;;  %1672 = vmatprep.subr.mxu1 %v2150_v0  ;;  %v263_v60 = vsub.f32 %v2329_v31, %v262_v44  ;;  %v257_v2 = vand.u32 4294901760, %v256_v51 }
  0x3a   :  { %1646 = vmatpush3.msra.mxu0 %v2257_v35  ;;  %1673 = vmatpush3.msra.mxu1 %v215_v1  ;;  %v276_v1 = vand.u32 4294901760, %v2352_v49  ;;  %v270_v7 = vsub.f32 %v2341_v38, %v269_v52  ;;  %v283_v9 = vand.u32 4294901760, %v2362_v54 }
  0x3b   :  { %1647 = vmatprep.subr.mxu0 %v2150_v0  ;;  %1674 = vmatprep.subr.mxu1 %v2150_v0 }
  0x3c   :  { %1648 = vmatpush3.msra.mxu0 %v2272_v45  ;;  %1675 = vmatpush3.msra.mxu1 %v222_v14  ;;  %v169_v14 = vand.u32 4294901760, %v168_v58  ;;  %v277_v36 = vsub.f32 %v2352_v49, %v276_v1  ;;  %v284_v41 = vsub.f32 %v2362_v54, %v283_v9  ;;  %v745_v58 = vld [vmem:[#allocation7 + $0x28] sm:$0xff] }
  0x3d   :  { %1649 = vmatprep.subr.mxu0 %v2150_v0  ;;  %1676 = vmatprep.subr.mxu1 %v2150_v0 }
  0x3e   :  { %1650 = vmatpush3.msra.mxu0 %v2280_v48  ;;  %1677 = vmatpush3.msra.mxu1 %v229_v33  ;;  %v264_v33 = vand.u32 4294901760, %v263_v60  ;;  %v285_v51 = vand.u32 4294901760, %v284_v41 }
  0x3f   :  { %1651 = vmatprep.subr.mxu0 %v2150_v0  ;;  %1678 = vmatprep.subr.mxu1 %v2150_v0 }
  0x40   :  { %1652 = vmatpush3.msra.mxu0 %v2297_v59  ;;  %1679 = vmatpush3.msra.mxu1 %v236_v39  ;;  %v271_v39 = vand.u32 4294901760, %v270_v7  ;;  %v2663_v7 = vand.u32 4294901760, %v745_v58 }
  0x41   :  { %1653 = vmatprep.subr.mxu0 %v2150_v0  ;;  %1680 = vmatprep.subr.mxu1 %v2150_v0 }
  0x42   :  { %1654 = vmatpush3.msra.mxu0 %v2306_v63  ;;  %1681 = vmatpush3.msra.mxu1 %v243_v50  ;;  %v278_v50 = vand.u32 4294901760, %v277_v36 }
  0x43   :  { %1655 = vmatprep.subr.mxu0 %v2150_v0  ;;  %1682 = vmatprep.subr.mxu1 %v2150_v0 }
  0x44   :  { %1656 = vmatpush3.msra.mxu0 %v2321_v13  ;;  %1683 = vmatpush3.msra.mxu1 %v250_v56 }
  0x45   :  { %1657 = vmatprep.subr.mxu0 %v2150_v0  ;;  %1684 = vmatprep.subr.mxu1 %v2150_v0 }
  0x46   :  { %1658 = vmatpush3.msra.mxu0 %v2333_v32  ;;  %1685 = vmatpush3.msra.mxu1 %v257_v2 }
  0x47   :  { %1686 = vmatprep.subr.mxu1 %v2150_v0  ;;  %1697 = vmatprep.subr.mxu0 %v2150_v0 }
  0x48   :  { %1660 = vmatmul.mubr.f32.vlgmr.msra.gmra.mxu0 %v169_v14  ;;  %1687 = vmatpush3.msra.mxu1 %v264_v33  ;;  %v744_v14 = vld [vmem:[#allocation7 + $0x20] sm:$0xff] }
  0x49   :  { %1698 = vmatpush3.msra.mxu0 %v2212_v15  ;;  %1688 = vmatprep.subr.mxu1 %v2150_v0  ;;  %v2677_v41 = vand.u32 4294901760, %v744_v14 }
  0x4a   :  { %1699 = vmatprep.subr.mxu0 %v2150_v0  ;;  %1689 = vmatpush3.msra.mxu1 %v271_v39  ;;  %v2675_v39 = vsub.f32 %v745_v58, %v2663_v7 }
  0x4b   :  { %1700 = vmatpush3.msra.mxu0 %v2215_v16  ;;  %1690 = vmatprep.subr.mxu1 %v2150_v0 }
  0x4c   :  { %1701 = vmatprep.subr.mxu0 %v2150_v0  ;;  %1691 = vmatpush3.msra.mxu1 %v278_v50 }
  0x4d   :  { %1702 = vmatpush3.msra.mxu0 %v2220_v18  ;;  %1692 = vmatprep.subr.mxu1 %v2150_v0  ;;  %v752_v18 = vld [vmem:[#allocation7 + $0x60] sm:$0xff] }
  0x4e   :  { %1703 = vmatprep.subr.mxu0 %v2150_v0  ;;  %1693 = vmatpush3.msra.mxu1 %v285_v51  ;;  %v743_v51 = vld [vmem:[#allocation7 + $0x18] sm:$0xff] }
  0x4f   :  { %1704 = vmatpush3.msra.mxu0 %v2224_v20  ;;  %1695 = vmatmul.mubr.f32.vlgmr.msra.gmra.mxu1 %v2302_v62 }
  0x50   :  { %1705 = vmatprep.subr.mxu0 %v2150_v0  ;;  %1732 = vmatprep.subr.mxu1 %v2150_v0 }
  0x51   :  { %1706 = vmatpush3.msra.mxu0 %v2227_v21  ;;  %1733 = vmatpush3.msra.mxu1 %v2198_v4 }
  0x52   :  { %1707 = vmatprep.subr.mxu0 %v2150_v0  ;;  %1734 = vmatprep.subr.mxu1 %v2150_v0 }
  0x53   :  { %1708 = vmatpush3.msra.mxu0 %v2241_v30  ;;  %1735 = vmatpush3.msra.mxu1 %v2200_v5 }
  0x54   :  { %1709 = vmatprep.subr.mxu0 %v2150_v0  ;;  %1736 = vmatprep.subr.mxu1 %v2150_v0 }
  0x55   :  { %1710 = vmatpush3.msra.mxu0 %v2254_v34  ;;  %1737 = vmatpush3.msra.mxu1 %v2202_v6  ;;  %v750_v34 = vld [vmem:[#allocation7 + $0x50] sm:$0xff] }
  0x56   :  { %1711 = vmatprep.subr.mxu0 %v2150_v0  ;;  %1738 = vmatprep.subr.mxu1 %v2150_v0 }
  0x57   :  { %1712 = vmatpush3.msra.mxu0 %v2269_v43  ;;  %1739 = vmatpush3.msra.mxu1 %v2204_v10 }
  0x58   :  { %1713 = vmatprep.subr.mxu0 %v2150_v0  ;;  %1740 = vmatprep.subr.mxu1 %v2150_v0 }
  0x59   :  { %1714 = vmatpush3.msra.mxu0 %v2276_v47  ;;  %1741 = vmatpush3.msra.mxu1 %v2206_v11  ;;  %v749_v47 = vld [vmem:[#allocation7 + $0x48] sm:$0xff] }
  0x5a   :  { %1715 = vmatprep.subr.mxu0 %v2150_v0  ;;  %1742 = vmatprep.subr.mxu1 %v2150_v0 }
  0x5b   :  { %1716 = vmatpush3.msra.mxu0 %v2288_v55  ;;  %1743 = vmatpush3.msra.mxu1 %v2208_v12 }
  0x5c   :  { %1717 = vmatprep.subr.mxu0 %v2150_v0  ;;  %1744 = vmatprep.subr.mxu1 %v2150_v0 }
  0x5d   :  { %1718 = vmatpush3.msra.mxu0 %v2300_v61  ;;  %1745 = vmatpush3.msra.mxu1 %v2217_v17  ;;  %v748_v61 = vld [vmem:[#allocation7 + $0x40] sm:$0xff] }
  0x5e   :  { %1719 = vmatprep.subr.mxu0 %v2150_v0  ;;  %1746 = vmatprep.subr.mxu1 %v2150_v0 }
  0x5f   :  { %1720 = vmatpush3.msra.mxu0 %v2314_v8  ;;  %1747 = vmatpush3.msra.mxu1 %v2233_v25  ;;  %v2627_v8 = vand.u32 4294901760, %v748_v61 }
  0x60   :  { %1721 = vmatprep.subr.mxu0 %v2150_v0  ;;  %1748 = vmatprep.subr.mxu1 %v2150_v0 }
  0x61   :  { %1722 = vmatpush3.msra.mxu0 %v2329_v31  ;;  %1749 = vmatpush3.msra.mxu1 %v2237_v28 }
  0x62   :  { %1723 = vmatprep.subr.mxu0 %v2150_v0  ;;  %1750 = vmatprep.subr.mxu1 %v2150_v0 }
  0x63   :  { %1724 = vmatpush3.msra.mxu0 %v2341_v38  ;;  %1751 = vmatpush3.msra.mxu1 %v2257_v35 }
  0x64   :  { %1725 = vmatprep.subr.mxu0 %v2150_v0  ;;  %1752 = vmatprep.subr.mxu1 %v2150_v0 }
  0x65   :  { %1726 = vmatpush3.msra.mxu0 %v2352_v49  ;;  %1753 = vmatpush3.msra.mxu1 %v2272_v45 }
  0x66   :  { %1727 = vmatprep.subr.mxu0 %v2150_v0  ;;  %1754 = vmatprep.subr.mxu1 %v2150_v0 }
  0x67   :  { %1728 = vmatpush3.msra.mxu0 %v2362_v54  ;;  %1729 = vmatprep.mubr.msk.f32.mxu0 %vm2151_vm0, %v2150_v0 }
  0x68   :  { %1755 = vmatpush3.msra.mxu1 %v2280_v48  ;;  %1730 = vmatmul.mubr.f32.vlgmr.msra.gmra.mxu0 %v2326_v26 }
  0x69   :  { %1756 = vmatprep.subr.mxu1 %v2150_v0  ;;  %1767 = vmatprep.subr.mxu0 %v2150_v0 }
  0x6a   :  { %1757 = vmatpush3.msra.mxu1 %v2297_v59  ;;  %1768 = vmatpush3.msra.mxu0 %v178_v22 }
  0x6b   :  { %1758 = vmatprep.subr.mxu1 %v2150_v0  ;;  %1769 = vmatprep.subr.mxu0 %v2150_v0 }
  0x6c   :  { %1759 = vmatpush3.msra.mxu1 %v2306_v63  ;;  %1770 = vmatpush3.msra.mxu0 %v185_v23  ;;  %v2585_v23 = vand.u32 4294901760, %v752_v18 }
  0x6d   :  { %1760 = vmatprep.subr.mxu1 %v2150_v0  ;;  %1771 = vmatprep.subr.mxu0 %v2150_v0 }
  0x6e   :  { %1761 = vmatpush3.msra.mxu1 %v2321_v13  ;;  %1772 = vmatpush3.msra.mxu0 %v192_v24  ;;  %v751_v24 = vld [vmem:[#allocation7 + $0x58] sm:$0xff] }
  0x6f   :  { %1762 = vmatprep.subr.mxu1 %v2150_v0  ;;  %1773 = vmatprep.subr.mxu0 %v2150_v0  ;;  %v2597_v30 = vand.u32 4294901760, %v751_v24 }
  0x70   :  { %1763 = vmatpush3.msra.mxu1 %v2333_v32  ;;  %1764 = vmatprep.mubr.msk.f32.mxu1 %vm2151_vm0, %v2150_v0 }
  0x71   :  { %1774 = vmatpush3.msra.mxu0 %v199_v27  ;;  %1765 = vmatmul.mubr.f32.vlgmr.msra.gmra.mxu1 %v167_v42  ;;  %v746_v42 = vld [vmem:[#allocation7 + $0x30] sm:$0xff] }
  0x72   :  { %1775 = vmatprep.subr.mxu0 %v2150_v0  ;;  %1802 = vmatprep.subr.mxu1 %v2150_v0  ;;  %v2655_v56 = vand.u32 4294901760, %v746_v42 }
  0x73   :  { %1776 = vmatpush3.msra.mxu0 %v206_v29  ;;  %1803 = vmatpush3.msra.mxu1 %v2198_v4  ;;  %v755_v4 = vld [vmem:[#allocation7 + $0x78] sm:$0xff]  ;;  %v2594_v29 = vsub.f32 %v752_v18, %v2585_v23  ;;  %v2687_v18 = vand.u32 4294901760, %v743_v51 }
  0x74   :  { %1777 = vmatprep.subr.mxu0 %v2150_v0  ;;  %1804 = vmatprep.subr.mxu1 %v2150_v0 }
  0x75   :  { %1778 = vmatpush3.msra.mxu0 %v213_v40  ;;  %1805 = vmatpush3.msra.mxu1 %v2200_v5  ;;  %v2561_v5 = vand.u32 4294901760, %v755_v4  ;;  %v878_v43 = vand.u32 4294901760, %v2594_v29 }
  0x76   :  { %1779 = vmatprep.subr.mxu0 %v2150_v0  ;;  %1806 = vmatprep.subr.mxu1 %v2150_v0 }
  0x77   :  { %1780 = vmatpush3.msra.mxu0 %v220_v46  ;;  %1807 = vmatpush3.msra.mxu1 %v2202_v6  ;;  %v754_v6 = vld [vmem:[#allocation7 + $0x70] sm:$0xff]  ;;  %v2608_v46 = vsub.f32 %v751_v24, %v2597_v30 }
  0x78   :  { %1781 = vmatprep.subr.mxu0 %v2150_v0  ;;  %1808 = vmatprep.subr.mxu1 %v2150_v0  ;;  %v742_v24 = vld [vmem:[#allocation7 + $0x10] sm:$0xff] }
  0x79   :  { %1782 = vmatpush3.msra.mxu0 %v227_v53  ;;  %1809 = vmatpush3.msra.mxu1 %v2204_v10  ;;  %v2564_v10 = vsub.f32 %v755_v4, %v2561_v5  ;;  %v879_v53 = vsub.f32 %v2594_v29, %v878_v43 }
  0x7a   :  { %1783 = vmatprep.subr.mxu0 %v2150_v0  ;;  %1810 = vmatprep.subr.mxu1 %v2150_v0 }
  0x7b   :  { %1784 = vmatpush3.msra.mxu0 %v234_v57  ;;  %1811 = vmatpush3.msra.mxu1 %v2206_v11  ;;  %v2566_v11 = vand.u32 4294901760, %v754_v6  ;;  %v857_v15 = vand.u32 4294901760, %v2564_v10  ;;  %v2617_v57 = vand.u32 4294901760, %v749_v47 }
  0x7c   :  { %1785 = vmatprep.subr.mxu0 %v2150_v0  ;;  %1812 = vmatprep.subr.mxu1 %v2150_v0 }
  0x7d   :  { %1786 = vmatpush3.msra.mxu0 %v241_v3  ;;  %1813 = vmatpush3.msra.mxu1 %v2208_v12  ;;  %v753_v12 = vld [vmem:[#allocation7 + $0x68] sm:$0xff]  ;;  %v2572_v16 = vsub.f32 %v754_v6, %v2566_v11  ;;  %v858_v20 = vsub.f32 %v2564_v10, %v857_v15  ;;  %v2625_v3 = vsub.f32 %v749_v47, %v2617_v57  ;;  %v2934_v6 = vand.u32 4294901760, %v2675_v39 }
  0x7e   :  { %1787 = vmatprep.subr.mxu0 %v2150_v0  ;;  %1814 = vmatprep.subr.mxu1 %v2150_v0  ;;  %v741_v47 = vld [vmem:[#allocation7 + $0x8] sm:$0xff] }
  0x7f   :  { %1788 = vmatpush3.msra.mxu0 %v248_v19  ;;  %1815 = vmatpush3.msra.mxu1 %v2217_v17  ;;  %v2574_v17 = vand.u32 4294901760, %v753_v12  ;;  %v864_v21 = vand.u32 4294901760, %v2572_v16  ;;  %v747_v19 = vld [vmem:[#allocation7 + $0x38] sm:$0xff]  ;;  %v899_v31 = vand.u32 4294901760, %v2625_v3 }
  0x80   :  { %1789 = vmatprep.subr.mxu0 %v2150_v0  ;;  %1816 = vmatprep.subr.mxu1 %v2150_v0 }
  0x81   :  { %1790 = vmatpush3.msra.mxu0 %v255_v37  ;;  %1817 = vmatpush3.msra.mxu1 %v2233_v25  ;;  %v2583_v22 = vsub.f32 %v753_v12, %v2574_v17  ;;  %v859_v25 = vand.u32 4294901760, %v858_v20  ;;  %v865_v27 = vsub.f32 %v2572_v16, %v864_v21  ;;  %v2642_v37 = vand.u32 4294901760, %v747_v19 }
  0x82   :  { %1791 = vmatprep.subr.mxu0 %v2150_v0  ;;  %1818 = vmatprep.subr.mxu1 %v2150_v0  ;;  %v900_v49 = vsub.f32 %v2625_v3, %v899_v31  ;;  %v2685_v12 = vsub.f32 %v744_v14, %v2677_v41 }
  0x83   :  { %1792 = vmatpush3.msra.mxu0 %v262_v44  ;;  %1819 = vmatpush3.msra.mxu1 %v2237_v28  ;;  %v871_v28 = vand.u32 4294901760, %v2583_v22  ;;  %v2652_v54 = vsub.f32 %v747_v19, %v2642_v37  ;;  %v740_v19 = vld [vmem:[#allocation7] sm:$0xff] }
  0x84   :  { %1793 = vmatprep.subr.mxu0 %v2150_v0  ;;  %1820 = vmatprep.subr.mxu1 %v2150_v0  ;;  %v901_v60 = vand.u32 4294901760, %v900_v49 }
  0x85   :  { %1794 = vmatpush3.msra.mxu0 %v269_v52  ;;  %1821 = vmatpush3.msra.mxu1 %v2257_v35  ;;  %v866_v35 = vand.u32 4294901760, %v865_v27  ;;  %v872_v40 = vsub.f32 %v2583_v22, %v871_v28  ;;  %v2936_v2 = vand.u32 4294901760, %v2652_v54  ;;  %v2933_v27 = vand.u32 4294901760, %v2685_v12 }
  0x86   :  { %1795 = vmatprep.subr.mxu0 %v2150_v0  ;;  %1822 = vmatprep.subr.mxu1 %v2150_v0 }
  0x87   :  { %1796 = vmatpush3.msra.mxu0 %v276_v1  ;;  %1823 = vmatpush3.msra.mxu1 %v2272_v45  ;;  %v2604_v45 = vand.u32 4294901760, %v750_v34  ;;  %v914_v36 = vsub.f32 %v2652_v54, %v2936_v2 }
  0x88   :  { %1797 = vmatprep.subr.mxu0 %v2150_v0  ;;  %1824 = vmatprep.subr.mxu1 %v2150_v0 }
  0x89   :  { %1798 = vmatpush3.msra.mxu0 %v283_v9  ;;  %1799 = vmatprep.mubr.msk.f32.mxu0 %vm2151_vm0, %v2150_v0  ;;  %v2615_v55 = vsub.f32 %v750_v34, %v2604_v45  ;;  %v2667_v9 = vsub.f32 %v746_v42, %v2655_v56  ;;  %v915_v4 = vand.u32 4294901760, %v914_v36  ;;  %v2700_v34 = vsub.f32 %v743_v51, %v2687_v18 }
  0x8a   :  { %1825 = vmatpush3.msra.mxu1 %v2280_v48  ;;  %1800 = vmatmul.mubr.f32.vlgmr.msra.gmra.mxu0 %v2302_v62  ;;  %v873_v48 = vand.u32 4294901760, %v872_v40 }
  0x8b   :  { %1826 = vmatprep.subr.mxu1 %v2150_v0  ;;  %1834 = vmatprep.mubr.msk.f32.mxu1 %vm2151_vm0, %v2150_v0  ;;  %v2935_v50 = vand.u32 4294901760, %v2667_v9 }
  0x8c   :  { %1827 = vmatpush3.msra.mxu1 %v2297_v59  ;;  %1837 = vmatprep.subr.mxu0 %v2150_v0  ;;  %v885_v59 = vand.u32 4294901760, %v2608_v46 }
  0x8d   :  { %1828 = vmatprep.subr.mxu1 %v2150_v0  ;;  %1869 = vmatprep.mubr.msk.f32.mxu0 %vm2151_vm0, %v2150_v0  ;;  %v921_v20 = vsub.f32 %v2667_v9, %v2935_v50 }
  0x8e   :  { %1829 = vmatpush3.msra.mxu1 %v2306_v63  ;;  %1838 = vmatpush3.msra.mxu0 %v2561_v5  ;;  %v892_v63 = vand.u32 4294901760, %v2615_v55 }
  0x8f   :  { %1830 = vmatprep.subr.mxu1 %v2150_v0  ;;  %1839 = vmatprep.subr.mxu0 %v2150_v0  ;;  %v922_v40 = vand.u32 4294901760, %v921_v20 }
  0x90   :  { %1831 = vmatpush3.msra.mxu1 %v2321_v13  ;;  %1840 = vmatpush3.msra.mxu0 %v2566_v11  ;;  %v886_v13 = vsub.f32 %v2608_v46, %v885_v59  ;;  %v893_v26 = vsub.f32 %v2615_v55, %v892_v63 }
  0x91   :  { %1832 = vmatprep.subr.mxu1 %v2150_v0  ;;  %1841 = vmatprep.subr.mxu0 %v2150_v0 }
  0x92   :  { %1833 = vmatpush3.msra.mxu1 %v2333_v32  ;;  %1842 = vmatpush3.msra.mxu0 %v2574_v17  ;;  %v2640_v32 = vsub.f32 %v748_v61, %v2627_v8  ;;  %v887_v38 = vand.u32 4294901760, %v886_v13  ;;  %v894_v44 = vand.u32 4294901760, %v893_v26  ;;  %v2932_v61 = vand.u32 4294901760, %v2700_v34 }
  0x93   :  { %1835 = vmatmul.mubr.f32.vlgmr.msra.gmra.mxu1 %v2302_v62  ;;  %1872 = vmatprep.subr.mxu1 %v2150_v0  ;;  %v880_v62 = vand.u32 4294901760, %v879_v53  ;;  %v935_v53 = vsub.f32 %v2685_v12, %v2933_v27  ;;  %v2715_v13 = vand.u32 4294901760, %v741_v47 }
  0x94   :  { %1904 = vmatprep.mubr.msk.f32.mxu1 %vm2151_vm0, %v2150_v0  ;;  %1843 = vmatprep.subr.mxu0 %v2150_v0  ;;  %v906_v52 = vand.u32 4294901760, %v2640_v32 }
  0x95   :  { %1844 = vmatpush3.msra.mxu0 %v2585_v23  ;;  %1873 = vmatpush3.msra.mxu1 %v859_v25  ;;  %v928_v25 = vsub.f32 %v2675_v39, %v2934_v6  ;;  %v936_v26 = vand.u32 4294901760, %v935_v53  ;;  %v2727_v49 = vsub.f32 %v741_v47, %v2715_v13 }
  0x96   :  { %1845 = vmatprep.subr.mxu0 %v2150_v0  ;;  %1874 = vmatprep.subr.mxu1 %v2150_v0  ;;  %v907_v1 = vsub.f32 %v2640_v32, %v906_v52 }
  0x97   :  { %1846 = vmatpush3.msra.mxu0 %v2597_v30  ;;  %1875 = vmatpush3.msra.mxu1 %v866_v35  ;;  %v2702_v35 = vand.u32 4294901760, %v742_v24  ;;  %v2930_v14 = vand.u32 4294901760, %v2727_v49 }
  0x98   :  { %1847 = vmatprep.subr.mxu0 %v2150_v0  ;;  %1876 = vmatprep.subr.mxu1 %v2150_v0  ;;  %v908_v33 = vand.u32 4294901760, %v907_v1 }
  0x99   :  { %1848 = vmatpush3.msra.mxu0 %v2604_v45  ;;  %1877 = vmatpush3.msra.mxu1 %v873_v48  ;;  %v929_v48 = vand.u32 4294901760, %v928_v25  ;;  %v956_v51 = vsub.f32 %v2727_v49, %v2930_v14 }
  0x9a   :  { %1849 = vmatprep.subr.mxu0 %v2150_v0  ;;  %1878 = vmatprep.subr.mxu1 %v2150_v0 }
  0x9b   :  { %1850 = vmatpush3.msra.mxu0 %v2617_v57  ;;  %1879 = vmatpush3.msra.mxu1 %v880_v62  ;;  %v2712_v62 = vsub.f32 %v742_v24, %v2702_v35  ;;  %v957_v20 = vand.u32 4294901760, %v956_v51 }
  0x9c   :  { %1851 = vmatprep.subr.mxu0 %v2150_v0  ;;  %1880 = vmatprep.subr.mxu1 %v2150_v0 }
  0x9d   :  { %1852 = vmatpush3.msra.mxu0 %v2627_v8  ;;  %1881 = vmatpush3.msra.mxu1 %v887_v38  ;;  %v942_v38 = vsub.f32 %v2700_v34, %v2932_v61  ;;  %v2931_v42 = vand.u32 4294901760, %v2712_v62 }
  0x9e   :  { %1853 = vmatprep.subr.mxu0 %v2150_v0  ;;  %1882 = vmatprep.subr.mxu1 %v2150_v0 }
  0x9f   :  { %1854 = vmatpush3.msra.mxu0 %v2642_v37  ;;  %1883 = vmatpush3.msra.mxu1 %v894_v44  ;;  %v2723_v44 = vand.u32 4294901760, %v740_v19  ;;  %v943_v58 = vand.u32 4294901760, %v942_v38 }
  0xa0   :  { %1855 = vmatprep.subr.mxu0 %v2150_v0  ;;  %1884 = vmatprep.subr.mxu1 %v2150_v0 }
  0xa1   :  { %1856 = vmatpush3.msra.mxu0 %v2655_v56  ;;  %1885 = vmatpush3.msra.mxu1 %v901_v60  ;;  %v949_v60 = vsub.f32 %v2712_v62, %v2931_v42  ;;  %v2735_v1 = vsub.f32 %v740_v19, %v2723_v44 }
  0xa2   :  { %1857 = vmatprep.subr.mxu0 %v2150_v0  ;;  %1886 = vmatprep.subr.mxu1 %v2150_v0 }
  0xa3   :  { %1858 = vmatpush3.msra.mxu0 %v2663_v7  ;;  %1887 = vmatpush3.msra.mxu1 %v908_v33  ;;  %v950_v33 = vand.u32 4294901760, %v949_v60  ;;  %v2929_v36 = vand.u32 4294901760, %v2735_v1 }
  0xa4   :  { %1859 = vmatprep.subr.mxu0 %v2150_v0  ;;  %1888 = vmatprep.subr.mxu1 %v2150_v0 }
  0xa5   :  { %1860 = vmatpush3.msra.mxu0 %v2677_v41  ;;  %1889 = vmatpush3.msra.mxu1 %v915_v4  ;;  %v963_v4 = vsub.f32 %v2735_v1, %v2929_v36 }
  0xa6   :  { %1861 = vmatprep.subr.mxu0 %v2150_v0  ;;  %1890 = vmatprep.subr.mxu1 %v2150_v0 }
  0xa7   :  { %1862 = vmatpush3.msra.mxu0 %v2687_v18  ;;  %1891 = vmatpush3.msra.mxu1 %v922_v40  ;;  %v964_v24 = vand.u32 4294901760, %v963_v4 }
  0xa8   :  { %1863 = vmatprep.subr.mxu0 %v2150_v0  ;;  %1892 = vmatprep.subr.mxu1 %v2150_v0 }
  0xa9   :  { %1864 = vmatpush3.msra.mxu0 %v2702_v35  ;;  %1893 = vmatpush3.msra.mxu1 %v929_v48 }
  0xaa   :  { %1865 = vmatprep.subr.mxu0 %v2150_v0  ;;  %1894 = vmatprep.subr.mxu1 %v2150_v0 }
  0xab   :  { %1866 = vmatpush3.msra.mxu0 %v2715_v13  ;;  %1895 = vmatpush3.msra.mxu1 %v936_v26 }
  0xac   :  { %1867 = vmatprep.subr.mxu0 %v2150_v0  ;;  %1896 = vmatprep.subr.mxu1 %v2150_v0 }
  0xad   :  { %1868 = vmatpush3.msra.mxu0 %v2723_v44  ;;  %1897 = vmatpush3.msra.mxu1 %v943_v58  ;;  %v1421_v58 = vld [vmem:[%s2925_s2] ss:$0 sm:$0xff] }
  0xae   :  { %1907 = vmatprep.subr.mxu0 %v2150_v0  ;;  %1898 = vmatprep.subr.mxu1 %v2150_v0 }
  0xaf   :  { %1899 = vmatpush3.msra.mxu1 %v950_v33 }
  0xb0   :  { %1900 = vmatprep.subr.mxu1 %v2150_v0 }
  0xb1   :  { %1901 = vmatpush3.msra.mxu1 %v957_v20 }
  0xb2   :  { %1902 = vmatprep.subr.mxu1 %v2150_v0 }
  0xb3   :  { %1903 = vmatpush3.msra.mxu1 %v964_v24 }
  0xb4   :  { %1942 = vmatprep.subr.mxu1 %v2150_v0 }
 0x108   :  { %v171_v25 = vpop.f32.mrf.mxu0 }
 0x109   :  { %v172_v60 = vadd.f32 %v1421_v58, %v171_v25 }
 0x10a   :  { %v1661_v40 = vpop.f32.mrf.mxu0 }
 0x10f   :  { %v322_v47 = vpop.f32.mrf.mxu1 }
 0x110   :  { %v323_v51 = vadd.f32 %v322_v47, %v172_v60 }
 0x111   :  { %v1696_v48 = vpop.f32.mrf.mxu1 }
 0x128   :  { %v426_v53 = vpop.f32.mrf.mxu0 }
 0x129   :  { %v427_v20 = vadd.f32 %v426_v53, %v323_v51 }
 0x12a   :  { %v1731_v19 = vpop.f32.mrf.mxu0 }
 0x131   :  { %v515_v26 = vpop.f32.mrf.mxu1 }
 0x132   :  { %v516_v24 = vadd.f32 %v515_v26, %v427_v20 }
 0x133   :  { %v1766_v38 = vpop.f32.mrf.mxu1 }
 0x14a   :  { %v634_v33 = vpop.f32.mrf.mxu0 }
 0x14b   :  { %v635_v36 = vadd.f32 %v634_v33, %v516_v24 }
 0x14c   :  { %v1801_v4 = vpop.f32.mrf.mxu0 }
 0x153   :  { %v721_v14 = vpop.f32.mrf.mxu1 }
 0x154   :  { %v722_v42 = vadd.f32 %v721_v14, %v635_v36 }
 0x155   :  { %v1836_v40 = vpop.f32.mrf.mxu1 }
 0x156   :  { %v726_v61 = vand.u32 2147483647, %v722_v42  ;;  %v725_v60 = vmax.f32 %v722_v42, 0.0 }
 0x158   :  { %v727_v48 = vsub.f32 0.0, %v726_v61 }
 0x15a   :  { %v728_v27 = vmul.f32 1.442695, %v727_v48 }
 0x15c   :  { %2055 = vpow2.f32 %v728_v27 }
 0x169   :  { %v2056_v19 = vpop.eup %2055 }
 0x16a   :  { %v730_v38 = vadd.f32 1.0, %v2056_v19  ;;  %v733_v6 = vmul.f32 -0.5, %v2056_v19  ;;  %v736_v2 = vand.u32 2147483647, %v2056_v19 }
 0x16c   :  { %2057 = vlog2.f32 %v730_v38  ;;  %v734_v50 = vadd.f32 1.0, %v733_v6  ;;  %vm737_vm1 = vcmp.lt.f32.partialorder %v736_v2, 0.0004427343 }
 0x16e   :  { %v735_v47 = vmul.f32 %v2056_v19, %v734_v50 }
 0x179   :  { %v2058_v25 = vpop.eup %2057 }
 0x17a   :  { %v732_v58 = vmul.f32 0.6931472, %v2058_v25 }
 0x17c   :  { %v738_v53 = vsel %vm737_vm1, %v735_v47, %v732_v58 }
 0x17d   :  { %v739_v26 = vadd.f32 %v738_v53, %v725_v60 }
 0x17f   :  { %v2756_v33 = vand.u32 4294901760, %v739_v26 }
 0x181   :  { %v2759_v14 = vsub.f32 %v739_v26, %v2756_v33  ;;  %1905 = vmatmul.mubr.f32.vlgmr.msra.gmra.mxu1 %v2756_v33 }
 0x182   :  { %1943 = vmatpush3.msra.mxu1 %v2561_v5  ;;  %1974 = vmatprep.mubr.msk.f32.mxu1 %vm2151_vm0, %v2150_v0 }
 0x183   :  { %1944 = vmatprep.subr.mxu1 %v2150_v0  ;;  %v846_v50 = vand.u32 4294901760, %v2759_v14 }
 0x184   :  { %1945 = vmatpush3.msra.mxu1 %v2566_v11 }
 0x185   :  { %1946 = vmatprep.subr.mxu1 %v2150_v0  ;;  %v847_v2 = vsub.f32 %v2759_v14, %v846_v50 }
 0x186   :  { %1947 = vmatpush3.msra.mxu1 %v2574_v17 }
 0x187   :  { %1948 = vmatprep.subr.mxu1 %v2150_v0  ;;  %v848_v6 = vand.u32 4294901760, %v847_v2 }
 0x188   :  { %1949 = vmatpush3.msra.mxu1 %v2585_v23 }
 0x189   :  { %1950 = vmatprep.subr.mxu1 %v2150_v0  ;;  %1870 = vmatmul.mubr.f32.vlgmr.msra.gmra.mxu0 %v848_v6 }
 0x18a   :  { %1908 = vmatpush3.msra.mxu0 %v2564_v10  ;;  %1951 = vmatpush3.msra.mxu1 %v2597_v30  ;;  %v2938_v10 = vand.u32 4294901760, %v2667_v9 }
 0x18b   :  { %1909 = vmatprep.subr.mxu0 %v2150_v0  ;;  %1952 = vmatprep.subr.mxu1 %v2150_v0 }
 0x18c   :  { %1910 = vmatpush3.msra.mxu0 %v2572_v16  ;;  %1953 = vmatpush3.msra.mxu1 %v2604_v45  ;;  %v2941_v16 = vand.u32 4294901760, %v2700_v34 }
 0x18d   :  { %1911 = vmatprep.subr.mxu0 %v2150_v0  ;;  %1954 = vmatprep.subr.mxu1 %v2150_v0 }
 0x18e   :  { %1912 = vmatpush3.msra.mxu0 %v2583_v22  ;;  %1955 = vmatpush3.msra.mxu1 %v2617_v57  ;;  %v2944_v22 = vand.u32 4294901760, %v2735_v1 }
 0x18f   :  { %1913 = vmatprep.subr.mxu0 %v2150_v0  ;;  %1956 = vmatprep.subr.mxu1 %v2150_v0 }
 0x190   :  { %1914 = vmatpush3.msra.mxu0 %v2594_v29  ;;  %1957 = vmatpush3.msra.mxu1 %v2627_v8 }
 0x191   :  { %1915 = vmatprep.subr.mxu0 %v2150_v0  ;;  %1958 = vmatprep.subr.mxu1 %v2150_v0 }
 0x192   :  { %1916 = vmatpush3.msra.mxu0 %v2608_v46  ;;  %1959 = vmatpush3.msra.mxu1 %v2642_v37 }
 0x193   :  { %1917 = vmatprep.subr.mxu0 %v2150_v0  ;;  %1960 = vmatprep.subr.mxu1 %v2150_v0 }
 0x194   :  { %1918 = vmatpush3.msra.mxu0 %v2615_v55  ;;  %1961 = vmatpush3.msra.mxu1 %v2655_v56 }
 0x195   :  { %1919 = vmatprep.subr.mxu0 %v2150_v0  ;;  %1962 = vmatprep.subr.mxu1 %v2150_v0 }
 0x196   :  { %1920 = vmatpush3.msra.mxu0 %v2625_v3  ;;  %1963 = vmatpush3.msra.mxu1 %v2663_v7 }
 0x197   :  { %1921 = vmatprep.subr.mxu0 %v2150_v0  ;;  %1964 = vmatprep.subr.mxu1 %v2150_v0 }
 0x198   :  { %1922 = vmatpush3.msra.mxu0 %v2640_v32  ;;  %1965 = vmatpush3.msra.mxu1 %v2677_v41 }
 0x199   :  { %1923 = vmatprep.subr.mxu0 %v2150_v0  ;;  %1966 = vmatprep.subr.mxu1 %v2150_v0 }
 0x19a   :  { %1924 = vmatpush3.msra.mxu0 %v2652_v54  ;;  %1967 = vmatpush3.msra.mxu1 %v2687_v18 }
 0x19b   :  { %1925 = vmatprep.subr.mxu0 %v2150_v0  ;;  %1968 = vmatprep.subr.mxu1 %v2150_v0 }
 0x19c   :  { %1926 = vmatpush3.msra.mxu0 %v2667_v9  ;;  %1969 = vmatpush3.msra.mxu1 %v2702_v35 }
 0x19d   :  { %1927 = vmatprep.subr.mxu0 %v2150_v0  ;;  %1970 = vmatprep.subr.mxu1 %v2150_v0 }
 0x19e   :  { %1928 = vmatpush3.msra.mxu0 %v2675_v39  ;;  %1971 = vmatpush3.msra.mxu1 %v2715_v13 }
 0x19f   :  { %1929 = vmatprep.subr.mxu0 %v2150_v0  ;;  %1972 = vmatprep.subr.mxu1 %v2150_v0 }
 0x1a0   :  { %1930 = vmatpush3.msra.mxu0 %v2685_v12  ;;  %1973 = vmatpush3.msra.mxu1 %v2723_v44 }
 0x1a1   :  { %1931 = vmatprep.subr.mxu0 %v2150_v0  ;;  %1975 = vmatmul.mubr.f32.vlgmr.msra.gmra.mxu1 %v846_v50 }
 0x1a2   :  { %2012 = vmatprep.subr.mxu1 %v2150_v0  ;;  %1932 = vmatpush3.msra.mxu0 %v2700_v34 }
 0x1a3   :  { %2013 = vmatpush3.msra.mxu1 %v2561_v5  ;;  %1933 = vmatprep.subr.mxu0 %v2150_v0  ;;  %v2937_v5 = vand.u32 4294901760, %v2652_v54 }
 0x1a4   :  { %2014 = vmatprep.subr.mxu1 %v2150_v0  ;;  %1934 = vmatpush3.msra.mxu0 %v2712_v62 }
 0x1a5   :  { %2015 = vmatpush3.msra.mxu1 %v2566_v11  ;;  %1935 = vmatprep.subr.mxu0 %v2150_v0  ;;  %v2939_v11 = vand.u32 4294901760, %v2675_v39 }
 0x1a6   :  { %2016 = vmatprep.subr.mxu1 %v2150_v0  ;;  %1936 = vmatpush3.msra.mxu0 %v2727_v49 }
 0x1a7   :  { %2017 = vmatpush3.msra.mxu1 %v2574_v17  ;;  %1937 = vmatprep.subr.mxu0 %v2150_v0  ;;  %v2942_v17 = vand.u32 4294901760, %v2712_v62 }
 0x1a8   :  { %2018 = vmatprep.subr.mxu1 %v2150_v0  ;;  %1938 = vmatpush3.msra.mxu0 %v2735_v1 }
 0x1a9   :  { %1939 = vmatprep.mubr.msk.f32.mxu0 %vm2151_vm0, %v2150_v0  ;;  %2019 = vmatpush3.msra.mxu1 %v2585_v23 }
 0x1aa   :  { %1940 = vmatmul.mubr.f32.vlgmr.msra.gmra.mxu0 %v2759_v14  ;;  %1977 = vmatprep.subr.mxu0 %v2150_v0 }
 0x1ab   :  { %2020 = vmatprep.subr.mxu1 %v2150_v0  ;;  %1978 = vmatpush3.msra.mxu0 %v857_v15  ;;  %v2940_v15 = vand.u32 4294901760, %v2685_v12 }
 0x1ac   :  { %2021 = vmatpush3.msra.mxu1 %v2597_v30  ;;  %1979 = vmatprep.subr.mxu0 %v2150_v0 }
 0x1ad   :  { %2022 = vmatprep.subr.mxu1 %v2150_v0  ;;  %1980 = vmatpush3.msra.mxu0 %v864_v21  ;;  %v2943_v21 = vand.u32 4294901760, %v2727_v49 }
 0x1ae   :  { %2023 = vmatpush3.msra.mxu1 %v2604_v45  ;;  %1981 = vmatprep.subr.mxu0 %v2150_v0 }
 0x1af   :  { %2024 = vmatprep.subr.mxu1 %v2150_v0  ;;  %1982 = vmatpush3.msra.mxu0 %v871_v28 }
 0x1b0   :  { %2025 = vmatpush3.msra.mxu1 %v2617_v57  ;;  %1983 = vmatprep.subr.mxu0 %v2150_v0  ;;  %v1422_v57 = vld [vmem:[%s2927_s4] ss:$0 sm:$0xff] }
 0x1b1   :  { %2026 = vmatprep.subr.mxu1 %v2150_v0  ;;  %1984 = vmatpush3.msra.mxu0 %v878_v43 }
 0x1b2   :  { %2027 = vmatpush3.msra.mxu1 %v2627_v8  ;;  %1985 = vmatprep.subr.mxu0 %v2150_v0 }
 0x1b3   :  { %2028 = vmatprep.subr.mxu1 %v2150_v0  ;;  %1986 = vmatpush3.msra.mxu0 %v885_v59 }
 0x1b4   :  { %2029 = vmatpush3.msra.mxu1 %v2642_v37  ;;  %1987 = vmatprep.subr.mxu0 %v2150_v0 }
 0x1b5   :  { %2030 = vmatprep.subr.mxu1 %v2150_v0  ;;  %1988 = vmatpush3.msra.mxu0 %v892_v63 }
 0x1b6   :  { %2031 = vmatpush3.msra.mxu1 %v2655_v56  ;;  %1989 = vmatprep.subr.mxu0 %v2150_v0 }
 0x1b7   :  { %2032 = vmatprep.subr.mxu1 %v2150_v0  ;;  %1990 = vmatpush3.msra.mxu0 %v899_v31 }
 0x1b8   :  { %2033 = vmatpush3.msra.mxu1 %v2663_v7  ;;  %1991 = vmatprep.subr.mxu0 %v2150_v0 }
 0x1b9   :  { %2034 = vmatprep.subr.mxu1 %v2150_v0  ;;  %1992 = vmatpush3.msra.mxu0 %v906_v52 }
 0x1ba   :  { %2035 = vmatpush3.msra.mxu1 %v2677_v41  ;;  %1993 = vmatprep.subr.mxu0 %v2150_v0 }
 0x1bb   :  { %2036 = vmatprep.subr.mxu1 %v2150_v0  ;;  %1994 = vmatpush3.msra.mxu0 %v2937_v5 }
 0x1bc   :  { %2037 = vmatpush3.msra.mxu1 %v2687_v18  ;;  %1995 = vmatprep.subr.mxu0 %v2150_v0 }
 0x1bd   :  { %2038 = vmatprep.subr.mxu1 %v2150_v0  ;;  %1996 = vmatpush3.msra.mxu0 %v2938_v10 }
 0x1be   :  { %2039 = vmatpush3.msra.mxu1 %v2702_v35  ;;  %1997 = vmatprep.subr.mxu0 %v2150_v0 }
 0x1bf   :  { %2040 = vmatprep.subr.mxu1 %v2150_v0  ;;  %1998 = vmatpush3.msra.mxu0 %v2939_v11 }
 0x1c0   :  { %2041 = vmatpush3.msra.mxu1 %v2715_v13  ;;  %1999 = vmatprep.subr.mxu0 %v2150_v0 }
 0x1c1   :  { %2042 = vmatprep.subr.mxu1 %v2150_v0  ;;  %2000 = vmatpush3.msra.mxu0 %v2940_v15 }
 0x1c2   :  { %2043 = vmatpush3.msra.mxu1 %v2723_v44  ;;  %2044 = vmatprep.mubr.msk.f32.mxu1 %vm2151_vm0, %v2150_v0 }
 0x1c3   :  { %2001 = vmatprep.subr.mxu0 %v2150_v0  ;;  %2045 = vmatmul.mubr.f32.vlgmr.msra.gmra.mxu1 %v2756_v33 }
 0x1c4   :  { %2002 = vmatpush3.msra.mxu0 %v2941_v16  ;;  %2009 = vmatprep.mubr.msk.f32.mxu0 %vm2151_vm0, %v2150_v0 }
 0x1c5   :  { %2003 = vmatprep.subr.mxu0 %v2150_v0 }
 0x1c6   :  { %2004 = vmatpush3.msra.mxu0 %v2942_v17 }
 0x1c7   :  { %2005 = vmatprep.subr.mxu0 %v2150_v0 }
 0x1c8   :  { %2006 = vmatpush3.msra.mxu0 %v2943_v21 }
 0x1c9   :  { %2007 = vmatprep.subr.mxu0 %v2150_v0 }
 0x1ca   :  { %2008 = vmatpush3.msra.mxu0 %v2944_v22 }
 0x1cb   :  { %2010 = vmatmul.mubr.f32.vlgmr.msra.gmra.mxu0 %v2756_v33 }
 0x241   :  { %v1001_v23 = vpop.f32.mrf.mxu1 }
 0x243   :  { %v1906_v28 = vpop.f32.mrf.mxu1 }
 0x249   :  { %v850_v29 = vpop.f32.mrf.mxu0 }
 0x24a   :  { %v851_v59 = vadd.f32 %v1422_v57, %v850_v29 }
 0x24b   :  { %v1871_v30 = vpop.f32.mrf.mxu0 }
 0x24c   :  { %v1002_v0 = vadd.f32 %v1001_v23, %v851_v59 }
 0x261   :  { %v1194_v43 = vpop.f32.mrf.mxu1 }
 0x263   :  { %v1976_v45 = vpop.f32.mrf.mxu1 }
 0x26a   :  { %v1105_v46 = vpop.f32.mrf.mxu0 }
 0x26b   :  { %v1106_v8 = vadd.f32 %v1105_v46, %v1002_v0 }
 0x26c   :  { %v1941_v55 = vpop.f32.mrf.mxu0 }
 0x26d   :  { %v1195_v31 = vadd.f32 %v1194_v43, %v1106_v8 }
 0x283   :  { %v1400_v63 = vpop.f32.mrf.mxu1 }
 0x285   :  { %v2046_v3 = vpop.f32.mrf.mxu1 }
 0x28b   :  { %v1313_v32 = vpop.f32.mrf.mxu0 }
 0x28c   :  { %v1314_v37 = vadd.f32 %v1313_v32, %v1195_v31 }
 0x28d   :  { %v2011_v52 = vpop.f32.mrf.mxu0 }
 0x28e   :  { %v1401_v54 = vadd.f32 %v1400_v63, %v1314_v37 }
 0x290   :  { %1404 = vst [vmem:[#allocation8] sm:$0x3] %v1401_v54 }
 0x291   :  { %2130 = shalt.err (!%p2127_p5)
}
 0x292   :  { %1414 = dma.vmem_to_hbm [thread:$0]  %s1412_s11, 32, %s2928_s5, [#allocation4]  }
 0x293   :  { %2143 = dma.done.wait [#allocation4], 32  }
 0x294   :  { %2144 = vsyncadd [#allocation4], 4294967264 }
 0x295   :  { %1418 = vsyncpa [#allocation3], 1 }
 0x296   :  { %1419 = vsyncpa [#allocation6], 1 }
 0x297   :  { %1420 = vsyncpa [#allocation4], 1 }

</bundles_post_ra>
